<compile_context>
chip_gen: v7x
topology: tpu7x:2x2x1
jax: 0.10.0
libtpu: 0.0.40
codegen_flags: <defaults>
</compile_context>

<pallas_src>
import math

import jax
import jax.numpy as jnp
from jax.experimental import pallas as pl
from jax.experimental.pallas import tpu as pltpu

HIDDEN = 256
LN_EPS = 1e-5
LOGIT_PAD = 128          # lane-dense logits / output slab width
NEG_BIG = -1e30          # bias for padded logit lanes -> exp() underflows to 0


def _ln_relu(h, gamma, beta):
    """torch-style LayerNorm (biased variance) followed by ReLU, in f32."""
    mean = jnp.mean(h, axis=-1, keepdims=True)
    c = h - mean
    var = jnp.mean(c * c, axis=-1, keepdims=True)
    inv = jax.lax.rsqrt(var + LN_EPS)
    return jnp.maximum(c * inv * gamma + beta, 0.0)


def actor_critic_kernel(x_ref, w1_ref, w2a_ref, w2c_ref, w3a_ref, vecs_ref, out_ref):
    H = HIDDEN
    xb = x_ref[...].astype(jnp.bfloat16)

    # Packed per-layer vectors (rows of a single (16, 256) f32 array).
    b1a, g1a, be1a = vecs_ref[0:1, :], vecs_ref[1:2, :], vecs_ref[2:3, :]
    b1c, g1c, be1c = vecs_ref[3:4, :], vecs_ref[4:5, :], vecs_ref[5:6, :]
    b2a, g2a, be2a = vecs_ref[6:7, :], vecs_ref[7:8, :], vecs_ref[8:9, :]
    b2c, g2c, be2c = vecs_ref[9:10, :], vecs_ref[10:11, :], vecs_ref[11:12, :]
    w3c_row = vecs_ref[12:13, :]                # critic head weight as a row
    b3c = vecs_ref[13:14, 0:1]                  # critic head bias (1,1)
    b3a = vecs_ref[14:15, 0:LOGIT_PAD]          # padded actor-head bias (pad lanes = -1e30)

    # ---- fused layer 1: [actor | critic] in one (input_dim, 512) matmul ----
    h1 = jnp.dot(xb, w1_ref[...], preferred_element_type=jnp.float32)   # (TB, 512)
    ha = _ln_relu(h1[:, :H] + b1a, g1a, be1a)
    hc = _ln_relu(h1[:, H:] + b1c, g1c, be1c)

    # ---- layer 2: two independent dots issued back-to-back ----
    za = jnp.dot(ha.astype(jnp.bfloat16), w2a_ref[...], preferred_element_type=jnp.float32)
    zc = jnp.dot(hc.astype(jnp.bfloat16), w2c_ref[...], preferred_element_type=jnp.float32)
    ha2 = _ln_relu(za + b2a, g2a, be2a)
    hc2 = _ln_relu(zc + b2c, g2c, be2c)

    # ---- actor head: lane-dense (128-wide) logits, softmax in f32 ----
    logits = jnp.dot(ha2.astype(jnp.bfloat16), w3a_ref[...],
                     preferred_element_type=jnp.float32) + b3a
    m = jnp.max(logits, axis=-1, keepdims=True)
    e = jnp.exp(logits - m)
    # Exact f32 normalization (approx reciprocal was not accurate enough for
    # the sum-to-1 guarantee; one exact divide per row is essentially free).
    probs = e / jnp.sum(e, axis=-1, keepdims=True)

    # ---- critic head: N=1 matmul replaced by VPU multiply + XLU reduce ----
    value = jnp.sum(hc2 * w3c_row, axis=-1, keepdims=True) + b3c

    # Pack value into lane 127 of the lane-dense output slab (single dense store).
    lane = jax.lax.broadcasted_iota(jnp.int32, out_ref.shape, 1)
    out_ref[...] = jnp.where(lane == (out_ref.shape[1] - 1), value, probs)


# ----------------------------------------------------------------------------
# Parameter construction / packing
# ----------------------------------------------------------------------------
def init_params(key, input_dim, output_dim):
    """PyTorch-default-style deterministic init (uniform +-1/sqrt(fan_in))."""
    keys = jax.random.split(key, 6)

    def linear(k, fan_in, fan_out):
        kw, kb = jax.random.split(k)
        bound = 1.0 / math.sqrt(fan_in)
        w = jax.random.uniform(kw, (fan_in, fan_out), jnp.float32, -bound, bound)
        b = jax.random.uniform(kb, (1, fan_out), jnp.float32, -bound, bound)
        return w, b

    def ln(dim):
        return jnp.ones((1, dim), jnp.float32), jnp.zeros((1, dim), jnp.float32)

    # actor
    w1a, b1a = linear(keys[0], input_dim, HIDDEN)
    g1a, be1a = ln(HIDDEN)
    w2a, b2a = linear(keys[1], HIDDEN, HIDDEN)
    g2a, be2a = ln(HIDDEN)
    w3a, b3a = linear(keys[2], HIDDEN, output_dim)
    # critic
    w1c, b1c = linear(keys[3], input_dim, HIDDEN)
    g1c, be1c = ln(HIDDEN)
    w2c, b2c = linear(keys[4], HIDDEN, HIDDEN)
    g2c, be2c = ln(HIDDEN)
    w3c, b3c = linear(keys[5], HIDDEN, 1)

    return (w1a, b1a, g1a, be1a, w2a, b2a, g2a, be2a, w3a, b3a,
            w1c, b1c, g1c, be1c, w2c, b2c, g2c, be2c, w3c, b3c)


def pack_params(params, output_dim):
    """Pack raw per-layer params into the kernel's operand layout."""
    (w1a, b1a, g1a, be1a, w2a, b2a, g2a, be2a, w3a, b3a,
     w1c, b1c, g1c, be1c, w2c, b2c, g2c, be2c, w3c, b3c) = params
    H = HIDDEN
    assert output_dim <= LOGIT_PAD - 2, "output_dim must leave lane 127 free for the value"

    # Fused layer-1 weight, bf16 matmul operands.
    w1cat = jnp.concatenate([w1a, w1c], axis=1).astype(jnp.bfloat16)      # (in, 2H)
    w2a_b = w2a.astype(jnp.bfloat16)
    w2c_b = w2c.astype(jnp.bfloat16)

    # Actor head padded to 128 lanes (pad weights = 0, pad bias = -1e30).
    w3a_pad = (jnp.zeros((H, LOGIT_PAD), jnp.float32)
               .at[:, :output_dim].set(w3a)).astype(jnp.bfloat16)
    b3a_pad = jnp.full((LOGIT_PAD,), NEG_BIG, jnp.float32).at[:output_dim].set(b3a[0])

    # All small vectors packed into one (16, 256) f32 array.
    rows = jnp.concatenate(
        [b1a, g1a, be1a, b1c, g1c, be1c,
         b2a, g2a, be2a, b2c, g2c, be2c,
         w3c.reshape(1, H),
         jnp.full((1, H), b3c[0, 0], jnp.float32)], axis=0)              # (14, H)
    vecs = jnp.zeros((16, H), jnp.float32)
    vecs = vecs.at[:14, :].set(rows)
    vecs = vecs.at[14, :LOGIT_PAD].set(b3a_pad)

    return w1cat, w2a_b, w2c_b, w3a_pad, vecs


# ----------------------------------------------------------------------------
# Forward wrapper
# ----------------------------------------------------------------------------
def actor_critic_forward(x, packed, output_dim, *, batch_tile=1024):
    w1cat, w2a, w2c, w3a_pad, vecs = packed
    B, input_dim = x.shape

    TB = min(batch_tile, B)
    B_pad = TB * pl.cdiv(B, TB)
    if B_pad != B:
        x = jnp.pad(x, ((0, B_pad - B), (0, 0)))

    const = lambda i: (0, 0)
    out = pl.pallas_call(
        actor_critic_kernel,
        out_shape=jax.ShapeDtypeStruct((B_pad, LOGIT_PAD), jnp.float32),
        grid=(B_pad // TB,),
        in_specs=[
            pl.BlockSpec((TB, input_dim), lambda i: (i, 0)),   # x: tiled over batch
            pl.BlockSpec(w1cat.shape, const),                  # weights: VMEM-resident
            pl.BlockSpec(w2a.shape, const),
            pl.BlockSpec(w2c.shape, const),
            pl.BlockSpec(w3a_pad.shape, const),
            pl.BlockSpec(vecs.shape, const),
        ],
        out_specs=pl.BlockSpec((TB, LOGIT_PAD), lambda i: (i, 0)),
        compiler_params=pltpu.CompilerParams(
            dimension_semantics=("parallel",),
            vmem_limit_bytes=32 * 1024 * 1024,
        ),
    )(x, w1cat, w2a, w2c, w3a_pad, vecs)

    probs = out[:B, :output_dim]
    value = out[:B, LOGIT_PAD - 1:LOGIT_PAD]
    return probs, value


# Pure-JAX f32 reference (mirrors the PyTorch module) for a sanity check.
def ref_forward(x, params):
    (w1a, b1a, g1a, be1a, w2a, b2a, g2a, be2a, w3a, b3a,
     w1c, b1c, g1c, be1c, w2c, b2c, g2c, be2c, w3c, b3c) = params

    def ln(h, g, b):
        m = jnp.mean(h, -1, keepdims=True)
        v = jnp.mean((h - m) ** 2, -1, keepdims=True)
        return (h - m) * jax.lax.rsqrt(v + LN_EPS) * g + b

    def trunk(w1, b1, g1, be1, w2, b2, g2, be2):
        h = jnp.maximum(ln(x @ w1 + b1, g1, be1), 0.0)
        return jnp.maximum(ln(h @ w2 + b2, g2, be2), 0.0)

    probs = jax.nn.softmax(trunk(w1a, b1a, g1a, be1a, w2a, b2a, g2a, be2a) @ w3a + b3a, axis=-1)
    value = trunk(w1c, b1c, g1c, be1c, w2c, b2c, g2c, be2c) @ w3c + b3c
    return probs, value


if __name__ == "__main__":
    key = jax.random.PRNGKey(0)
    k_x, k_p = jax.random.split(key)

    B, INPUT_DIM, OUTPUT_DIM = 8, 16, 8
    x = jax.random.normal(k_x, (B, INPUT_DIM), dtype=jnp.float32)
    params = init_params(k_p, INPUT_DIM, OUTPUT_DIM)
    packed = pack_params(params, OUTPUT_DIM)

    probs, value = actor_critic_forward(x, packed, OUTPUT_DIM)
    jax.block_until_ready((probs, value))

    # sanity checks
    assert probs.shape == (B, OUTPUT_DIM)
    assert value.shape == (B, 1)
    assert bool(jnp.all(probs >= 0.0))
    # exact f32 normalization -> sums are 1 to within f32 rounding
    assert bool(jnp.all(jnp.abs(jnp.sum(probs, axis=-1) - 1.0) < 1e-3))

    # compare against the f32 reference (bf16 matmul operands -> small deviation)
    p_ref, v_ref = ref_forward(x, params)
    assert bool(jnp.max(jnp.abs(probs - p_ref)) < 7.5e-2)
    assert bool(jnp.max(jnp.abs(value - v_ref)) < 2.5e-1)

    print("KERNEL_OK")
</pallas_src>

<mosaic_0001>
module attributes {stable_mosaic.version = 11 : i64} {
  func.func @actor_critic_kernel(%arg0: i32, %arg1: memref<8x16xf32, #tpu.memory_space<vmem>>, %arg2: memref<16x512xbf16, #tpu.memory_space<vmem>>, %arg3: memref<256x256xbf16, #tpu.memory_space<vmem>>, %arg4: memref<256x256xbf16, #tpu.memory_space<vmem>>, %arg5: memref<256x128xbf16, #tpu.memory_space<vmem>>, %arg6: memref<16x256xf32, #tpu.memory_space<vmem>>, %arg7: memref<8x128xf32, #tpu.memory_space<vmem>>) attributes {dimension_semantics = [#tpu.dimension_semantics<parallel>], iteration_bounds = array<i64: 1>, scalar_prefetch = 0 : i64, scratch_operands = 0 : i64, tpu.core_type = #tpu.core_type<tc>, window_params = [{transform_indices = @transform_0, window_bounds = array<i64: 8, 16>}, {pipeline_mode = #tpu.pipeline_mode<synchronous>, transform_indices = @transform_1, window_bounds = array<i64: 16, 512>}, {pipeline_mode = #tpu.pipeline_mode<synchronous>, transform_indices = @transform_2, window_bounds = array<i64: 256, 256>}, {pipeline_mode = #tpu.pipeline_mode<synchronous>, transform_indices = @transform_3, window_bounds = array<i64: 256, 256>}, {pipeline_mode = #tpu.pipeline_mode<synchronous>, transform_indices = @transform_4, window_bounds = array<i64: 256, 128>}, {pipeline_mode = #tpu.pipeline_mode<synchronous>, transform_indices = @transform_5, window_bounds = array<i64: 16, 256>}, {transform_indices = @transform_6, window_bounds = array<i64: 8, 128>}]} {
    %c0 = arith.constant 0 : index
    %c0_0 = arith.constant 0 : index
    %0 = vector.load %arg1[%c0, %c0_0] : memref<8x16xf32, #tpu.memory_space<vmem>>, vector<8x16xf32>
    %1 = arith.truncf %0 : vector<8x16xf32> to vector<8x16xbf16>
    %c0_1 = arith.constant 0 : index
    %c0_2 = arith.constant 0 : index
    %2 = vector.load %arg6[%c0_1, %c0_2] : memref<16x256xf32, #tpu.memory_space<vmem>>, vector<1x256xf32>
    %c1 = arith.constant 1 : index
    %c0_3 = arith.constant 0 : index
    %3 = vector.load %arg6[%c1, %c0_3] : memref<16x256xf32, #tpu.memory_space<vmem>>, vector<1x256xf32>
    %c2 = arith.constant 2 : index
    %c0_4 = arith.constant 0 : index
    %4 = vector.load %arg6[%c2, %c0_4] : memref<16x256xf32, #tpu.memory_space<vmem>>, vector<1x256xf32>
    %c3 = arith.constant 3 : index
    %c0_5 = arith.constant 0 : index
    %5 = vector.load %arg6[%c3, %c0_5] : memref<16x256xf32, #tpu.memory_space<vmem>>, vector<1x256xf32>
    %c4 = arith.constant 4 : index
    %c0_6 = arith.constant 0 : index
    %6 = vector.load %arg6[%c4, %c0_6] : memref<16x256xf32, #tpu.memory_space<vmem>>, vector<1x256xf32>
    %c5 = arith.constant 5 : index
    %c0_7 = arith.constant 0 : index
    %7 = vector.load %arg6[%c5, %c0_7] : memref<16x256xf32, #tpu.memory_space<vmem>>, vector<1x256xf32>
    %c6 = arith.constant 6 : index
    %c0_8 = arith.constant 0 : index
    %8 = vector.load %arg6[%c6, %c0_8] : memref<16x256xf32, #tpu.memory_space<vmem>>, vector<1x256xf32>
    %c7 = arith.constant 7 : index
    %c0_9 = arith.constant 0 : index
    %9 = vector.load %arg6[%c7, %c0_9] : memref<16x256xf32, #tpu.memory_space<vmem>>, vector<1x256xf32>
    %c8 = arith.constant 8 : index
    %c0_10 = arith.constant 0 : index
    %10 = vector.load %arg6[%c8, %c0_10] : memref<16x256xf32, #tpu.memory_space<vmem>>, vector<1x256xf32>
    %c9 = arith.constant 9 : index
    %c0_11 = arith.constant 0 : index
    %11 = vector.load %arg6[%c9, %c0_11] : memref<16x256xf32, #tpu.memory_space<vmem>>, vector<1x256xf32>
    %c10 = arith.constant 10 : index
    %c0_12 = arith.constant 0 : index
    %12 = vector.load %arg6[%c10, %c0_12] : memref<16x256xf32, #tpu.memory_space<vmem>>, vector<1x256xf32>
    %c11 = arith.constant 11 : index
    %c0_13 = arith.constant 0 : index
    %13 = vector.load %arg6[%c11, %c0_13] : memref<16x256xf32, #tpu.memory_space<vmem>>, vector<1x256xf32>
    %c12 = arith.constant 12 : index
    %c0_14 = arith.constant 0 : index
    %14 = vector.load %arg6[%c12, %c0_14] : memref<16x256xf32, #tpu.memory_space<vmem>>, vector<1x256xf32>
    %c13 = arith.constant 13 : index
    %c0_15 = arith.constant 0 : index
    %15 = vector.load %arg6[%c13, %c0_15] : memref<16x256xf32, #tpu.memory_space<vmem>>, vector<1x1xf32>
    %c14 = arith.constant 14 : index
    %c0_16 = arith.constant 0 : index
    %16 = vector.load %arg6[%c14, %c0_16] : memref<16x256xf32, #tpu.memory_space<vmem>>, vector<1x128xf32>
    %c0_17 = arith.constant 0 : index
    %c0_18 = arith.constant 0 : index
    %17 = vector.load %arg2[%c0_17, %c0_18] : memref<16x512xbf16, #tpu.memory_space<vmem>>, vector<16x512xbf16>
    %cst = arith.constant dense<0.000000e+00> : vector<8x512xf32>
    %18 = tpu.matmul %1, %17, %cst {dimension_numbers = #tpu.dot_dimension_numbers<[1], [0], [0], [1], [0, 0, 1, 1], [], []>} : vector<8x16xbf16>, vector<16x512xbf16>, vector<8x512xf32> -> vector<8x512xf32>
    %19 = vector.extract_strided_slice %18 {offsets = [0, 0], sizes = [8, 256], strides = [1, 1]} : vector<8x512xf32> to vector<8x256xf32>
    %20 = vector.broadcast %2 : vector<1x256xf32> to vector<8x256xf32>
    %21 = arith.addf %19, %20 : vector<8x256xf32>
    %cst_19 = arith.constant dense<0.000000e+00> : vector<8xf32>
    %22 = vector.multi_reduction <add>, %21, %cst_19 [1] : vector<8x256xf32> to vector<8xf32>
    %23 = vector.shape_cast %22 : vector<8xf32> to vector<8x1xf32>
    %cst_20 = arith.constant 2.560000e+02 : f32
    %24 = vector.broadcast %cst_20 : f32 to vector<8x1xf32>
    %25 = arith.divf %23, %24 : vector<8x1xf32>
    %26 = vector.broadcast %25 : vector<8x1xf32> to vector<8x256xf32>
    %27 = arith.subf %21, %26 : vector<8x256xf32>
    %28 = arith.mulf %27, %27 : vector<8x256xf32>
    %cst_21 = arith.constant dense<0.000000e+00> : vector<8xf32>
    %29 = vector.multi_reduction <add>, %28, %cst_21 [1] : vector<8x256xf32> to vector<8xf32>
    %30 = vector.shape_cast %29 : vector<8xf32> to vector<8x1xf32>
    %cst_22 = arith.constant 2.560000e+02 : f32
    %31 = vector.broadcast %cst_22 : f32 to vector<8x1xf32>
    %32 = arith.divf %30, %31 : vector<8x1xf32>
    %cst_23 = arith.constant 9.99999974E-6 : f32
    %33 = vector.broadcast %cst_23 : f32 to vector<8x1xf32>
    %34 = arith.addf %32, %33 : vector<8x1xf32>
    %35 = math.rsqrt %34 : vector<8x1xf32>
    %36 = vector.broadcast %35 : vector<8x1xf32> to vector<8x256xf32>
    %37 = arith.mulf %27, %36 : vector<8x256xf32>
    %38 = vector.broadcast %3 : vector<1x256xf32> to vector<8x256xf32>
    %39 = arith.mulf %37, %38 : vector<8x256xf32>
    %40 = vector.broadcast %4 : vector<1x256xf32> to vector<8x256xf32>
    %41 = arith.addf %39, %40 : vector<8x256xf32>
    %cst_24 = arith.constant 0.000000e+00 : f32
    %42 = vector.broadcast %cst_24 : f32 to vector<8x256xf32>
    %43 = arith.maximumf %41, %42 : vector<8x256xf32>
    %44 = vector.extract_strided_slice %18 {offsets = [0, 256], sizes = [8, 256], strides = [1, 1]} : vector<8x512xf32> to vector<8x256xf32>
    %45 = vector.broadcast %5 : vector<1x256xf32> to vector<8x256xf32>
    %46 = arith.addf %44, %45 : vector<8x256xf32>
    %cst_25 = arith.constant dense<0.000000e+00> : vector<8xf32>
    %47 = vector.multi_reduction <add>, %46, %cst_25 [1] : vector<8x256xf32> to vector<8xf32>
    %48 = vector.shape_cast %47 : vector<8xf32> to vector<8x1xf32>
    %cst_26 = arith.constant 2.560000e+02 : f32
    %49 = vector.broadcast %cst_26 : f32 to vector<8x1xf32>
    %50 = arith.divf %48, %49 : vector<8x1xf32>
    %51 = vector.broadcast %50 : vector<8x1xf32> to vector<8x256xf32>
    %52 = arith.subf %46, %51 : vector<8x256xf32>
    %53 = arith.mulf %52, %52 : vector<8x256xf32>
    %cst_27 = arith.constant dense<0.000000e+00> : vector<8xf32>
    %54 = vector.multi_reduction <add>, %53, %cst_27 [1] : vector<8x256xf32> to vector<8xf32>
    %55 = vector.shape_cast %54 : vector<8xf32> to vector<8x1xf32>
    %cst_28 = arith.constant 2.560000e+02 : f32
    %56 = vector.broadcast %cst_28 : f32 to vector<8x1xf32>
    %57 = arith.divf %55, %56 : vector<8x1xf32>
    %cst_29 = arith.constant 9.99999974E-6 : f32
    %58 = vector.broadcast %cst_29 : f32 to vector<8x1xf32>
    %59 = arith.addf %57, %58 : vector<8x1xf32>
    %60 = math.rsqrt %59 : vector<8x1xf32>
    %61 = vector.broadcast %60 : vector<8x1xf32> to vector<8x256xf32>
    %62 = arith.mulf %52, %61 : vector<8x256xf32>
    %63 = vector.broadcast %6 : vector<1x256xf32> to vector<8x256xf32>
    %64 = arith.mulf %62, %63 : vector<8x256xf32>
    %65 = vector.broadcast %7 : vector<1x256xf32> to vector<8x256xf32>
    %66 = arith.addf %64, %65 : vector<8x256xf32>
    %cst_30 = arith.constant 0.000000e+00 : f32
    %67 = vector.broadcast %cst_30 : f32 to vector<8x256xf32>
    %68 = arith.maximumf %66, %67 : vector<8x256xf32>
    %69 = arith.truncf %43 : vector<8x256xf32> to vector<8x256xbf16>
    %c0_31 = arith.constant 0 : index
    %c0_32 = arith.constant 0 : index
    %70 = vector.load %arg3[%c0_31, %c0_32] : memref<256x256xbf16, #tpu.memory_space<vmem>>, vector<256x256xbf16>
    %cst_33 = arith.constant dense<0.000000e+00> : vector<8x256xf32>
    %71 = tpu.matmul %69, %70, %cst_33 {dimension_numbers = #tpu.dot_dimension_numbers<[1], [0], [0], [1], [0, 0, 1, 1], [], []>} : vector<8x256xbf16>, vector<256x256xbf16>, vector<8x256xf32> -> vector<8x256xf32>
    %72 = arith.truncf %68 : vector<8x256xf32> to vector<8x256xbf16>
    %c0_34 = arith.constant 0 : index
    %c0_35 = arith.constant 0 : index
    %73 = vector.load %arg4[%c0_34, %c0_35] : memref<256x256xbf16, #tpu.memory_space<vmem>>, vector<256x256xbf16>
    %cst_36 = arith.constant dense<0.000000e+00> : vector<8x256xf32>
    %74 = tpu.matmul %72, %73, %cst_36 {dimension_numbers = #tpu.dot_dimension_numbers<[1], [0], [0], [1], [0, 0, 1, 1], [], []>} : vector<8x256xbf16>, vector<256x256xbf16>, vector<8x256xf32> -> vector<8x256xf32>
    %75 = vector.broadcast %8 : vector<1x256xf32> to vector<8x256xf32>
    %76 = arith.addf %71, %75 : vector<8x256xf32>
    %cst_37 = arith.constant dense<0.000000e+00> : vector<8xf32>
    %77 = vector.multi_reduction <add>, %76, %cst_37 [1] : vector<8x256xf32> to vector<8xf32>
    %78 = vector.shape_cast %77 : vector<8xf32> to vector<8x1xf32>
    %cst_38 = arith.constant 2.560000e+02 : f32
    %79 = vector.broadcast %cst_38 : f32 to vector<8x1xf32>
    %80 = arith.divf %78, %79 : vector<8x1xf32>
    %81 = vector.broadcast %80 : vector<8x1xf32> to vector<8x256xf32>
    %82 = arith.subf %76, %81 : vector<8x256xf32>
    %83 = arith.mulf %82, %82 : vector<8x256xf32>
    %cst_39 = arith.constant dense<0.000000e+00> : vector<8xf32>
    %84 = vector.multi_reduction <add>, %83, %cst_39 [1] : vector<8x256xf32> to vector<8xf32>
    %85 = vector.shape_cast %84 : vector<8xf32> to vector<8x1xf32>
    %cst_40 = arith.constant 2.560000e+02 : f32
    %86 = vector.broadcast %cst_40 : f32 to vector<8x1xf32>
    %87 = arith.divf %85, %86 : vector<8x1xf32>
    %cst_41 = arith.constant 9.99999974E-6 : f32
    %88 = vector.broadcast %cst_41 : f32 to vector<8x1xf32>
    %89 = arith.addf %87, %88 : vector<8x1xf32>
    %90 = math.rsqrt %89 : vector<8x1xf32>
    %91 = vector.broadcast %90 : vector<8x1xf32> to vector<8x256xf32>
    %92 = arith.mulf %82, %91 : vector<8x256xf32>
    %93 = vector.broadcast %9 : vector<1x256xf32> to vector<8x256xf32>
    %94 = arith.mulf %92, %93 : vector<8x256xf32>
    %95 = vector.broadcast %10 : vector<1x256xf32> to vector<8x256xf32>
    %96 = arith.addf %94, %95 : vector<8x256xf32>
    %cst_42 = arith.constant 0.000000e+00 : f32
    %97 = vector.broadcast %cst_42 : f32 to vector<8x256xf32>
    %98 = arith.maximumf %96, %97 : vector<8x256xf32>
    %99 = vector.broadcast %11 : vector<1x256xf32> to vector<8x256xf32>
    %100 = arith.addf %74, %99 : vector<8x256xf32>
    %cst_43 = arith.constant dense<0.000000e+00> : vector<8xf32>
    %101 = vector.multi_reduction <add>, %100, %cst_43 [1] : vector<8x256xf32> to vector<8xf32>
    %102 = vector.shape_cast %101 : vector<8xf32> to vector<8x1xf32>
    %cst_44 = arith.constant 2.560000e+02 : f32
    %103 = vector.broadcast %cst_44 : f32 to vector<8x1xf32>
    %104 = arith.divf %102, %103 : vector<8x1xf32>
    %105 = vector.broadcast %104 : vector<8x1xf32> to vector<8x256xf32>
    %106 = arith.subf %100, %105 : vector<8x256xf32>
    %107 = arith.mulf %106, %106 : vector<8x256xf32>
    %cst_45 = arith.constant dense<0.000000e+00> : vector<8xf32>
    %108 = vector.multi_reduction <add>, %107, %cst_45 [1] : vector<8x256xf32> to vector<8xf32>
    %109 = vector.shape_cast %108 : vector<8xf32> to vector<8x1xf32>
    %cst_46 = arith.constant 2.560000e+02 : f32
    %110 = vector.broadcast %cst_46 : f32 to vector<8x1xf32>
    %111 = arith.divf %109, %110 : vector<8x1xf32>
    %cst_47 = arith.constant 9.99999974E-6 : f32
    %112 = vector.broadcast %cst_47 : f32 to vector<8x1xf32>
    %113 = arith.addf %111, %112 : vector<8x1xf32>
    %114 = math.rsqrt %113 : vector<8x1xf32>
    %115 = vector.broadcast %114 : vector<8x1xf32> to vector<8x256xf32>
    %116 = arith.mulf %106, %115 : vector<8x256xf32>
    %117 = vector.broadcast %12 : vector<1x256xf32> to vector<8x256xf32>
    %118 = arith.mulf %116, %117 : vector<8x256xf32>
    %119 = vector.broadcast %13 : vector<1x256xf32> to vector<8x256xf32>
    %120 = arith.addf %118, %119 : vector<8x256xf32>
    %cst_48 = arith.constant 0.000000e+00 : f32
    %121 = vector.broadcast %cst_48 : f32 to vector<8x256xf32>
    %122 = arith.maximumf %120, %121 : vector<8x256xf32>
    %123 = arith.truncf %98 : vector<8x256xf32> to vector<8x256xbf16>
    %c0_49 = arith.constant 0 : index
    %c0_50 = arith.constant 0 : index
    %124 = vector.load %arg5[%c0_49, %c0_50] : memref<256x128xbf16, #tpu.memory_space<vmem>>, vector<256x128xbf16>
    %cst_51 = arith.constant dense<0.000000e+00> : vector<8x128xf32>
    %125 = tpu.matmul %123, %124, %cst_51 {dimension_numbers = #tpu.dot_dimension_numbers<[1], [0], [0], [1], [0, 0, 1, 1], [], []>} : vector<8x256xbf16>, vector<256x128xbf16>, vector<8x128xf32> -> vector<8x128xf32>
    %126 = vector.broadcast %16 : vector<1x128xf32> to vector<8x128xf32>
    %127 = arith.addf %125, %126 : vector<8x128xf32>
    %cst_52 = arith.constant dense<0xFF800000> : vector<8xf32>
    %128 = vector.multi_reduction <maximumf>, %127, %cst_52 [1] : vector<8x128xf32> to vector<8xf32>
    %129 = vector.shape_cast %128 : vector<8xf32> to vector<8x1xf32>
    %130 = vector.broadcast %129 : vector<8x1xf32> to vector<8x128xf32>
    %131 = arith.subf %127, %130 : vector<8x128xf32>
    %132 = math.exp %131 : vector<8x128xf32>
    %cst_53 = arith.constant dense<0.000000e+00> : vector<8xf32>
    %133 = vector.multi_reduction <add>, %132, %cst_53 [1] : vector<8x128xf32> to vector<8xf32>
    %134 = vector.shape_cast %133 : vector<8xf32> to vector<8x1xf32>
    %135 = vector.broadcast %134 : vector<8x1xf32> to vector<8x128xf32>
    %136 = arith.divf %132, %135 : vector<8x128xf32>
    %137 = vector.broadcast %14 : vector<1x256xf32> to vector<8x256xf32>
    %138 = arith.mulf %122, %137 : vector<8x256xf32>
    %cst_54 = arith.constant dense<0.000000e+00> : vector<8xf32>
    %139 = vector.multi_reduction <add>, %138, %cst_54 [1] : vector<8x256xf32> to vector<8xf32>
    %140 = vector.shape_cast %139 : vector<8xf32> to vector<8x1xf32>
    %141 = vector.broadcast %15 : vector<1x1xf32> to vector<8x1xf32>
    %142 = arith.addf %140, %141 : vector<8x1xf32>
    %143 = tpu.iota {dimensions = array<i32: 1>} : vector<8x128xi32>
    %c127_i32 = arith.constant 127 : i32
    %144 = vector.broadcast %c127_i32 : i32 to vector<8x128xi32>
    %145 = arith.cmpi eq, %143, %144 : vector<8x128xi32>
    %146 = vector.shape_cast %142 : vector<8x1xf32> to vector<8x1xf32>
    %147 = vector.broadcast %146 : vector<8x1xf32> to vector<8x128xf32>
    %148 = arith.select %145, %147, %136 : vector<8x128xi1>, vector<8x128xf32>
    %c0_55 = arith.constant 0 : index
    %c0_56 = arith.constant 0 : index
    %149 = vector.load %arg7[%c0_55, %c0_56] : memref<8x128xf32, #tpu.memory_space<vmem>>, vector<8x128xf32>
    tpu.vector_store %arg7[%c0_55, %c0_56], %148 {strides = array<i32>} : memref<8x128xf32, #tpu.memory_space<vmem>>, vector<8x128xf32>,
    return
  }
  func.func @transform_0(%arg0: i32) -> (i32, i32) {
    %c0_i32 = arith.constant 0 : i32
    %c0_i32_0 = arith.constant 0 : i32
    return %arg0, %c0_i32 : i32, i32
  }
  func.func @transform_1(%arg0: i32) -> (i32, i32) {
    %c0_i32 = arith.constant 0 : i32
    %c0_i32_0 = arith.constant 0 : i32
    %c0_i32_1 = arith.constant 0 : i32
    return %c0_i32, %c0_i32_0 : i32, i32
  }
  func.func @transform_2(%arg0: i32) -> (i32, i32) {
    %c0_i32 = arith.constant 0 : i32
    %c0_i32_0 = arith.constant 0 : i32
    %c0_i32_1 = arith.constant 0 : i32
    return %c0_i32, %c0_i32_0 : i32, i32
  }
  func.func @transform_3(%arg0: i32) -> (i32, i32) {
    %c0_i32 = arith.constant 0 : i32
    %c0_i32_0 = arith.constant 0 : i32
    %c0_i32_1 = arith.constant 0 : i32
    return %c0_i32, %c0_i32_0 : i32, i32
  }
  func.func @transform_4(%arg0: i32) -> (i32, i32) {
    %c0_i32 = arith.constant 0 : i32
    %c0_i32_0 = arith.constant 0 : i32
    %c0_i32_1 = arith.constant 0 : i32
    return %c0_i32, %c0_i32_0 : i32, i32
  }
  func.func @transform_5(%arg0: i32) -> (i32, i32) {
    %c0_i32 = arith.constant 0 : i32
    %c0_i32_0 = arith.constant 0 : i32
    %c0_i32_1 = arith.constant 0 : i32
    return %c0_i32, %c0_i32_0 : i32, i32
  }
  func.func @transform_6(%arg0: i32) -> (i32, i32) {
    %c0_i32 = arith.constant 0 : i32
    %c0_i32_0 = arith.constant 0 : i32
    return %arg0, %c0_i32 : i32, i32
  }
}

</mosaic_0001>

<bundles_post_ra>
// kernel: tpu_custom_call.1
= control target key start
LH: loop header
LB: loop body
LE: loop exit
PB: predicated region body
PF: predicated region fallthrough
CT: control target
= control target key end

     0   :  { %11 = vsyncpa [#allocation3], 0  ;;  %s1794_s0 = inlined_call_operand.hbm [shape: f32[8,16], index: 0, kind: input, shape index: {}]   ;;  %s1795_s1 = inlined_call_operand.hbm [shape: bf16[16,512], index: 1, kind: input, shape index: {}]   ;;  %s1796_s2 = inlined_call_operand.hbm [shape: bf16[256,256], index: 2, kind: input, shape index: {}]   ;;  %s1797_s3 = inlined_call_operand.hbm [shape: bf16[256,256], index: 3, kind: input, shape index: {}]   ;;  %s1798_s4 = inlined_call_operand.hbm [shape: bf16[256,128], index: 4, kind: input, shape index: {}]   ;;  %s1799_s5 = inlined_call_operand.hbm [shape: f32[16,256], index: 5, kind: input, shape index: {}]   ;;  %s1800_s6 = inlined_call_operand.hbm [shape: f32[8,128], index: 6, kind: output, shape index: {}]  }
   0x1   :  { %12 = vsyncpa [#allocation6], 0 }
   0x2   :  { %13 = vsyncpa [#allocation9], 0 }
   0x3   :  { %14 = vsyncpa [#allocation12], 0 }
   0x4   :  { %15 = vsyncpa [#allocation4], 0  ;;  %s1581_s21 = smov [#allocation5]   ;;  %s1417_s25 = scalar_lea.hbm %s1795_s1, 512 }
   0x5   :  { %s31_s22 = sshll.u32 %s1581_s21, 4  ;;  %p1418_p0 = scmp.ne.s32.totalorder %s1795_s1, %s1417_s25  ;;  %s32_s22 = int_to_ptr.vmem [resolvable:$true] %s31_s22 }
   0x6   :  { %p1421_p1 = scmp.lt.u32.totalorder %s1417_s25, %s1795_s1 }
   0x8   :  { %p1423_p2 = pnand %p1421_p1, %p1418_p0 }
   0xa   :  { %1426 = shalt.err (!%p1423_p2)
}
   0xb   :  { %s1427_s30 = scalar_lea.vmem %s32_s22, 512  ;;  %p1432_p4 = scmp.lt.s32.totalorder %s32_s22, %s32_s22 }
   0xc   :  { %p1428_p3 = scmp.ne.s32.totalorder %s32_s22, %s1427_s30  ;;  %p1433_p5 = scmp.lt.s32.totalorder %s1427_s30, %s1427_s30 }
   0xe   :  { %p1434_p6 = por %p1433_p5, %p1432_p4 }
  0x10   :  { %p1435_p7 = pnand %p1434_p6, %p1428_p3 }
  0x12   :  { %1438 = shalt.err (!%p1435_p7)
}
  0x13   :  { %s1582_s7 = smov 256   ;;  %s1583_s8 = smov 16  }
  0x14   :  { %37 = dma.hbm_to_vmem [thread:$0]  %s1795_s1, 512, %s32_s22, [#allocation6], %s1582_s7, %s1582_s7, %s1583_s8  }
  0x15   :  { %s1584_s11 = smov [#allocation8]   ;;  %s1585_s13 = smov [#allocation2]  }
  0x16   :  { %s55_s12 = sshll.u32 %s1584_s11, 4  ;;  %s22_s14 = sshll.u32 %s1585_s13, 4  ;;  %s56_s12 = int_to_ptr.vmem [resolvable:$true] %s55_s12  ;;  %s23_s14 = int_to_ptr.vmem [resolvable:$true] %s22_s14 }
  0x17   :  { %s1439_s17 = scalar_lea.hbm %s1797_s3, 4096 }
  0x18   :  { %p1440_p8 = scmp.ne.s32.totalorder %s1797_s3, %s1439_s17  ;;  %p1443_p9 = scmp.lt.u32.totalorder %s1439_s17, %s1797_s3 }
  0x1a   :  { %p1445_p10 = pnand %p1443_p9, %p1440_p8 }
  0x1c   :  { %1448 = shalt.err (!%p1445_p10)
}
  0x1d   :  { %s1449_s1 = scalar_lea.vmem %s56_s12, 4096  ;;  %p1454_p12 = scmp.lt.s32.totalorder %s56_s12, %s56_s12 }
  0x1e   :  { %p1450_p11 = scmp.ne.s32.totalorder %s56_s12, %s1449_s1  ;;  %p1455_p13 = scmp.lt.s32.totalorder %s1449_s1, %s1449_s1 }
  0x20   :  { %p1456_p0 = por %p1455_p13, %p1454_p12 }
  0x22   :  { %p1457_p1 = pnand %p1456_p0, %p1450_p11 }
  0x24   :  { %1460 = shalt.err (!%p1457_p1)
}
  0x25   :  { %s1586_s22 = smov 128   ;;  %s1587_s23 = smov 8  }
  0x26   :  { %61 = dma.hbm_to_vmem [thread:$0]  %s1797_s3, 4096, %s56_s12, [#allocation9], %s1586_s22, %s1586_s22, %s1587_s23  }
  0x27   :  { %s1461_s28 = scalar_lea.hbm %s1794_s0, 128 }
  0x28   :  { %p1462_p2 = scmp.ne.s32.totalorder %s1794_s0, %s1461_s28  ;;  %p1465_p3 = scmp.lt.u32.totalorder %s1461_s28, %s1794_s0 }
  0x2a   :  { %p1467_p4 = pnand %p1465_p3, %p1462_p2 }
  0x2c   :  { %1470 = shalt.err (!%p1467_p4)
}
  0x2d   :  { %s1471_s11 = scalar_lea.vmem %s23_s14, 128  ;;  %p1476_p6 = scmp.lt.s32.totalorder %s23_s14, %s23_s14 }
  0x2e   :  { %p1472_p5 = scmp.ne.s32.totalorder %s23_s14, %s1471_s11  ;;  %p1477_p7 = scmp.lt.s32.totalorder %s1471_s11, %s1471_s11 }
  0x30   :  { %p1478_p8 = por %p1477_p7, %p1476_p6 }
  0x32   :  { %p1479_p9 = pnand %p1478_p8, %p1472_p5 }
  0x34   :  { %1482 = shalt.err (!%p1479_p9)
}
  0x35   :  { %25 = dma.hbm_to_vmem [thread:$0]  %s1794_s0, 128, %s23_s14, [#allocation3]  }
  0x36   :  { %s1588_s13 = smov [#allocation7]   ;;  %s1589_s16 = smov [#allocation10]  }
  0x37   :  { %s43_s15 = sshll.u32 %s1588_s13, 4  ;;  %s67_s17 = sshll.u32 %s1589_s16, 4  ;;  %s44_s15 = int_to_ptr.vmem [resolvable:$true] %s43_s15  ;;  %s68_s17 = int_to_ptr.vmem [resolvable:$true] %s67_s17 }
  0x38   :  { %s1483_s20 = scalar_lea.hbm %s1796_s2, 4096 }
  0x39   :  { %p1484_p10 = scmp.ne.s32.totalorder %s1796_s2, %s1483_s20  ;;  %p1487_p11 = scmp.lt.u32.totalorder %s1483_s20, %s1796_s2 }
  0x3b   :  { %p1489_p12 = pnand %p1487_p11, %p1484_p10 }
  0x3d   :  { %1492 = shalt.err (!%p1489_p12)
}
  0x3e   :  { %s1493_s0 = scalar_lea.vmem %s44_s15, 4096  ;;  %p1498_p0 = scmp.lt.s32.totalorder %s44_s15, %s44_s15 }
  0x3f   :  { %p1494_p13 = scmp.ne.s32.totalorder %s44_s15, %s1493_s0  ;;  %p1499_p1 = scmp.lt.s32.totalorder %s1493_s0, %s1493_s0 }
  0x41   :  { %p1500_p2 = por %p1499_p1, %p1498_p0 }
  0x43   :  { %p1501_p3 = pnand %p1500_p2, %p1494_p13 }
  0x45   :  { %1504 = shalt.err (!%p1501_p3)
}
  0x46   :  { %49 = dma.hbm_to_vmem [thread:$0]  %s1796_s2, 4096, %s44_s15, [#allocation6], %s1586_s22, %s1586_s22, %s1587_s23  }
  0x47   :  { %s1505_s29 = scalar_lea.hbm %s1798_s4, 2048 }
  0x48   :  { %p1506_p4 = scmp.ne.s32.totalorder %s1798_s4, %s1505_s29  ;;  %p1509_p5 = scmp.lt.u32.totalorder %s1505_s29, %s1798_s4 }
  0x4a   :  { %p1511_p6 = pnand %p1509_p5, %p1506_p4 }
  0x4c   :  { %1514 = shalt.err (!%p1511_p6)
}
  0x4d   :  { %s1515_s3 = scalar_lea.vmem %s68_s17, 2048  ;;  %p1520_p8 = scmp.lt.s32.totalorder %s68_s17, %s68_s17 }
  0x4e   :  { %p1516_p7 = scmp.ne.s32.totalorder %s68_s17, %s1515_s3  ;;  %p1521_p9 = scmp.lt.s32.totalorder %s1515_s3, %s1515_s3 }
  0x50   :  { %p1522_p10 = por %p1521_p9, %p1520_p8 }
  0x52   :  { %p1523_p11 = pnand %p1522_p10, %p1516_p7 }
  0x54   :  { %1526 = shalt.err (!%p1523_p11)
}
  0x55   :  { %s1590_s2 = smov 64   ;;  %s1591_s22 = smov 4  }
  0x56   :  { %73 = dma.hbm_to_vmem [thread:$0]  %s1798_s4, 2048, %s68_s17, [#allocation9], %s1590_s2, %s1590_s2, %s1591_s22  }
  0x57   :  { %s1592_s13 = smov [#allocation11]   ;;  %s1527_s19 = scalar_lea.hbm %s1799_s5, 512 }
  0x58   :  { %s79_s15 = sshll.u32 %s1592_s13, 4  ;;  %p1528_p12 = scmp.ne.s32.totalorder %s1799_s5, %s1527_s19  ;;  %s80_s15 = int_to_ptr.vmem [resolvable:$true] %s79_s15 }
  0x59   :  { %p1531_p13 = scmp.lt.u32.totalorder %s1527_s19, %s1799_s5 }
  0x5b   :  { %p1533_p0 = pnand %p1531_p13, %p1528_p12 }
  0x5d   :  { %1536 = shalt.err (!%p1533_p0)
}
  0x5e   :  { %s1537_s25 = scalar_lea.vmem %s80_s15, 512  ;;  %p1542_p2 = scmp.lt.s32.totalorder %s80_s15, %s80_s15 }
  0x5f   :  { %p1538_p1 = scmp.ne.s32.totalorder %s80_s15, %s1537_s25  ;;  %p1543_p3 = scmp.lt.s32.totalorder %s1537_s25, %s1537_s25 }
  0x61   :  { %p1544_p4 = por %p1543_p3, %p1542_p2 }
  0x63   :  { %p1545_p5 = pnand %p1544_p4, %p1538_p1 }
  0x65   :  { %1548 = shalt.err (!%p1545_p5)
}
  0x66   :  { %85 = dma.hbm_to_vmem [thread:$0]  %s1799_s5, 512, %s80_s15, [#allocation12], %s1582_s7, %s1582_s7, %s1583_s8  }
  0x67   :  { %1571 = dma.done.wait [#allocation3], 128  }
  0x68   :  { %1572 = vsyncadd [#allocation3], 4294967168 }
  0x69   :  { %1573 = dma.done.wait [#allocation6], 4608  }
  0x6a   :  { %1574 = vsyncadd [#allocation6], 4294962688 }
  0x6b   :  { %1575 = dma.done.wait [#allocation9], 6144  }
  0x6c   :  { %1576 = vsyncadd [#allocation9], 4294961152 }
  0x6d   :  { %1577 = dma.done.wait [#allocation12], 512  }
  0x6e   :  { %1578 = vsyncadd [#allocation12], 4294966784  ;;  %v1593_v0 = vmov 0   ;;  %v1287_v1 = vld [vmem:[#allocation5 + $0x4] ss:$16 sps:$4 sm:$0xff]   ;;  %v105_v3 = vld [vmem:[#allocation2] sm:$0xff]  ;;  %v245_v7 = vlaneseq }
  0x6f   :  { %194 = vmatprep.mubr.bf16.mxu1 %v1593_v0  ;;  %1285 = vset.pattern.permute.xlu1 %v1593_v0  ;;  %v1289_v2 = vld [vmem:[#allocation5] ss:$16 sps:$4 sm:$0xff]   ;;  %v106_v4 = vpack.c.bf16 %v105_v3, %v105_v3  ;;  %v1292_v5 = vld [vmem:[#allocation5 + $0xc] ss:$16 sps:$4 sm:$0xff]   ;;  %vm158_vm0 = vcmask 130048   ;;  %s1594_s5 = smov [#allocation13]  }
  0x70   :  { %1286 = vset.pattern.permute.xlu0 %v1593_v0  ;;  %162 = vmatprep.subr.bf16.mxu1 %v1287_v1  ;;  %v1290_v6 = vld [vmem:[#allocation5 + $0x8] ss:$16 sps:$4 sm:$0xff]   ;;  %v246_v8 = vshrl.u32 %v245_v7, 7  ;;  %v1293_v31 = vld [vmem:[#allocation7 + $0x4] ss:$8 sps:$4 sm:$0xff]   ;;  %s1151_s7 = sshll.u32 %s1594_s5, 4  ;;  %s1152_s7 = int_to_ptr.vmem [resolvable:$true] %s1151_s7 }
  0x71   :  { %163 = vmatpush1.bf16.msra.mxu1 %v1289_v2  ;;  %v107_v10 = vld [vmem:[#allocation11] ss:$8 sm:$0x3]  ;;  %v113_v19 = vld [vmem:[#allocation11 + $0x3] ss:$8 sm:$0x3]  ;;  %598 = vmatprep.subr.bf16.mxu0 %v1293_v31  ;;  %p1554_p7 = scmp.lt.s32.totalorder %s1152_s7, %s1152_s7 }
  0x72   :  { %203 = vmatprep.subr.bf16.mxu1 %v1292_v5  ;;  %v1715_v9 = vsub.s32 0, %v246_v8  ;;  %v1717_v11 = vsub.s32 1, %v246_v8  ;;  %v1295_v32 = vld [vmem:[#allocation7] ss:$8 sps:$4 sm:$0xff]   ;;  %v1296_v33 = vld [vmem:[#allocation7 + $0x14] ss:$8 sps:$4 sm:$0xff]  }
  0x73   :  { %v1301_v34 = vld [vmem:[#allocation8] ss:$8 sps:$4 sm:$0xff]   ;;  %v1303_v35 = vld [vmem:[#allocation8 + $0x4] ss:$8 sps:$4 sm:$0xff]   ;;  %599 = vmatpush1.bf16.msra.mxu0 %v1295_v32  ;;  %v1298_v36 = vld [vmem:[#allocation7 + $0x10] ss:$8 sps:$4 sm:$0xff]  }
  0x74   :  { %1167 = vmatmul.mubr.msk.bf16.vlgmr.msra.gmra.mrb[0].mxu1 %vm158_vm0, %v106_v4  ;;  %v248_v12 = vrot.slane %v107_v10, %v1715_v9  ;;  %v252_v13 = vrot.slane %v107_v10, %v1717_v11  ;;  %v306_v22 = vrot.slane %v113_v19, %v1715_v9  ;;  %v310_v23 = vrot.slane %v113_v19, %v1717_v11  ;;  %v1309_v37 = vld [vmem:[#allocation8 + $0x14] ss:$8 sps:$4 sm:$0xff]   ;;  %v1299_v38 = vld [vmem:[#allocation7 + $0x24] ss:$8 sps:$4 sm:$0xff]   ;;  %v1307_v39 = vld [vmem:[#allocation8 + $0x10] ss:$8 sps:$4 sm:$0xff]  }
  0x75   :  { %204 = vmatpush1.bf16.msra.mxu1 %v1290_v6  ;;  %235 = vmatprep.mubr.bf16.mxu1 %v1593_v0  ;;  %v1315_v40 = vld [vmem:[#allocation8 + $0x24] ss:$8 sps:$4 sm:$0xff]   ;;  %v1304_v41 = vld [vmem:[#allocation7 + $0x20] ss:$8 sps:$4 sm:$0xff]   ;;  %v1305_v42 = vld [vmem:[#allocation7 + $0x34] ss:$8 sps:$4 sm:$0xff]  }
  0x76   :  { %600 = vmatprep.subr.bf16.mxu0 %v1296_v33  ;;  %854 = vmatprep.subr.bf16.mxu1 %v1303_v35  ;;  %v1313_v43 = vld [vmem:[#allocation8 + $0x20] ss:$8 sps:$4 sm:$0xff]   ;;  %v1321_v44 = vld [vmem:[#allocation8 + $0x34] ss:$8 sps:$4 sm:$0xff]   ;;  %v1310_v45 = vld [vmem:[#allocation7 + $0x30] ss:$8 sps:$4 sm:$0xff]  }
  0x77   :  { %601 = vmatpush1.bf16.msra.mxu0 %v1298_v36  ;;  %v1311_v46 = vld [vmem:[#allocation7 + $0x44] ss:$8 sps:$4 sm:$0xff]   ;;  %v1319_v47 = vld [vmem:[#allocation8 + $0x30] ss:$8 sps:$4 sm:$0xff]   ;;  %v1316_v49 = vld [vmem:[#allocation7 + $0x40] ss:$8 sps:$4 sm:$0xff]  }
  0x78   :  { %602 = vmatprep.subr.bf16.mxu0 %v1299_v38  ;;  %v1327_v48 = vld [vmem:[#allocation8 + $0x44] ss:$8 sps:$4 sm:$0xff]   ;;  %v1317_v50 = vld [vmem:[#allocation7 + $0x54] ss:$8 sps:$4 sm:$0xff]   ;;  %v1325_v51 = vld [vmem:[#allocation8 + $0x40] ss:$8 sps:$4 sm:$0xff]  }
  0x79   :  { %v1333_v52 = vld [vmem:[#allocation8 + $0x54] ss:$8 sps:$4 sm:$0xff]   ;;  %v1322_v53 = vld [vmem:[#allocation7 + $0x50] ss:$8 sps:$4 sm:$0xff]   ;;  %v1323_v54 = vld [vmem:[#allocation7 + $0x64] ss:$8 sps:$4 sm:$0xff]  }
  0x7a   :  { %v1331_v55 = vld [vmem:[#allocation8 + $0x50] ss:$8 sps:$4 sm:$0xff]   ;;  %v1339_v56 = vld [vmem:[#allocation8 + $0x64] ss:$8 sps:$4 sm:$0xff]   ;;  %v1328_v57 = vld [vmem:[#allocation7 + $0x60] ss:$8 sps:$4 sm:$0xff]  }
  0x7b   :  { %603 = vmatpush1.bf16.msra.mxu0 %v1304_v41  ;;  %v1329_v58 = vld [vmem:[#allocation7 + $0x74] ss:$8 sps:$4 sm:$0xff]   ;;  %v1337_v59 = vld [vmem:[#allocation8 + $0x60] ss:$8 sps:$4 sm:$0xff]   ;;  %v1334_v61 = vld [vmem:[#allocation7 + $0x70] ss:$8 sps:$4 sm:$0xff]  }
  0x7c   :  { %1168 = vmatmul.mubr.msk.bf16.vlgmr.msra.gmra.mrb[4].mxu1 %vm158_vm0, %v106_v4  ;;  %604 = vmatprep.subr.bf16.mxu0 %v1305_v42  ;;  %v1345_v60 = vld [vmem:[#allocation8 + $0x74] ss:$8 sps:$4 sm:$0xff]   ;;  %v1335_v62 = vld [vmem:[#allocation7 + $0x84] ss:$8 sps:$4 sm:$0xff]   ;;  %v1343_v63 = vld [vmem:[#allocation8 + $0x70] ss:$8 sps:$4 sm:$0xff]  }
  0x7d   :  { %855 = vmatpush1.bf16.msra.mxu1 %v1301_v34  ;;  %v1340_v0 = vld [vmem:[#allocation7 + $0x80] ss:$8 sps:$4 sm:$0xff]   ;;  %v1341_v1 = vld [vmem:[#allocation7 + $0x94] ss:$8 sps:$4 sm:$0xff]   ;;  %v1346_v2 = vld [vmem:[#allocation7 + $0x90] ss:$8 sps:$4 sm:$0xff]  }
  0x7e   :  { %856 = vmatprep.subr.bf16.mxu1 %v1309_v37  ;;  %v1364_v31 = vld [vmem:[#allocation7 + $0xc0] ss:$8 sps:$4 sm:$0xff]   ;;  %v1365_v32 = vld [vmem:[#allocation7 + $0xd4] ss:$8 sps:$4 sm:$0xff]   ;;  %v1367_v33 = vld [vmem:[#allocation8 + $0xb0] ss:$8 sps:$4 sm:$0xff]  }
  0x7f   :  { %605 = vmatpush1.bf16.msra.mxu0 %v1310_v45  ;;  %v1369_v34 = vld [vmem:[#allocation8 + $0xb4] ss:$8 sps:$4 sm:$0xff]   ;;  %v1370_v35 = vld [vmem:[#allocation7 + $0xd0] ss:$8 sps:$4 sm:$0xff]   ;;  %v1371_v36 = vld [vmem:[#allocation7 + $0xe4] ss:$8 sps:$4 sm:$0xff]  }
  0x80   :  { %606 = vmatprep.subr.bf16.mxu0 %v1311_v46  ;;  %v1375_v37 = vld [vmem:[#allocation8 + $0xc4] ss:$8 sps:$4 sm:$0xff]   ;;  %v1373_v38 = vld [vmem:[#allocation8 + $0xc0] ss:$8 sps:$4 sm:$0xff]   ;;  %v1381_v41 = vld [vmem:[#allocation8 + $0xd4] ss:$8 sps:$4 sm:$0xff]  }
  0x81   :  { %857 = vmatpush1.bf16.msra.mxu1 %v1307_v39  ;;  %v1376_v39 = vld [vmem:[#allocation7 + $0xe0] ss:$8 sps:$4 sm:$0xff]   ;;  %v1379_v42 = vld [vmem:[#allocation8 + $0xd0] ss:$8 sps:$4 sm:$0xff]   ;;  %v1388_v46 = vld [vmem:[#allocation8 + $0xf4] ss:$8 sps:$4 sm:$0xff]  }
  0x82   :  { %858 = vmatprep.subr.bf16.mxu1 %v1315_v40  ;;  %v1377_v40 = vld [vmem:[#allocation7 + $0xf4] ss:$8 sps:$4 sm:$0xff]   ;;  %v1383_v45 = vld [vmem:[#allocation8 + $0xe0] ss:$8 sps:$4 sm:$0xff]   ;;  %s1549_s8 = scalar_lea.vmem %s1152_s7, 128 }
  0x83   :  { %607 = vmatpush1.bf16.msra.mxu0 %v1316_v49  ;;  %p1550_p6 = scmp.ne.s32.totalorder %s1152_s7, %s1549_s8  ;;  %p1555_p8 = scmp.lt.s32.totalorder %s1549_s8, %s1549_s8 }
  0x84   :  { %608 = vmatprep.subr.bf16.mxu0 %v1317_v50 }
  0x85   :  { %859 = vmatpush1.bf16.msra.mxu1 %v1313_v43  ;;  %v1382_v43 = vld [vmem:[#allocation7 + $0xf0] ss:$8 sps:$4 sm:$0xff]   ;;  %p1556_p9 = por %p1555_p8, %p1554_p7 }
  0x86   :  { %860 = vmatprep.subr.bf16.mxu1 %v1321_v44  ;;  %v1385_v44 = vld [vmem:[#allocation8 + $0xe4] ss:$8 sps:$4 sm:$0xff]  }
  0x87   :  { %609 = vmatpush1.bf16.msra.mxu0 %v1322_v53  ;;  %p1557_p10 = pnand %p1556_p9, %p1550_p6 }
  0x88   :  { %610 = vmatprep.subr.bf16.mxu0 %v1323_v54  ;;  %v109_v54 = vld [vmem:[#allocation11 + $0x1] ss:$8 sm:$0x3] }
  0x89   :  { %861 = vmatpush1.bf16.msra.mxu1 %v1319_v47  ;;  %v1386_v47 = vld [vmem:[#allocation8 + $0xf0] ss:$8 sps:$4 sm:$0xff]  }
  0x8a   :  { %862 = vmatprep.subr.bf16.mxu1 %v1327_v48 }
  0x8b   :  { %611 = vmatpush1.bf16.msra.mxu0 %v1328_v57  ;;  %v282_v57 = vrot.slane %v109_v54, %v1717_v11 }
  0x8c   :  { %612 = vmatprep.subr.bf16.mxu0 %v1329_v58 }
  0x8d   :  { %863 = vmatpush1.bf16.msra.mxu1 %v1325_v51 }
  0x8e   :  { %864 = vmatprep.subr.bf16.mxu1 %v1333_v52 }
  0x8f   :  { %613 = vmatpush1.bf16.msra.mxu0 %v1334_v61 }
  0x90   :  { %614 = vmatprep.subr.bf16.mxu0 %v1335_v62 }
  0x91   :  { %865 = vmatpush1.bf16.msra.mxu1 %v1331_v55  ;;  %v111_v55 = vld [vmem:[#allocation11 + $0x2] ss:$8 sm:$0x3] }
  0x92   :  { %866 = vmatprep.subr.bf16.mxu1 %v1339_v56  ;;  %v278_v56 = vrot.slane %v109_v54, %v1715_v9  ;;  %v295_v61 = vrot.slane %v111_v55, %v1717_v11 }
  0x93   :  { %615 = vmatpush1.bf16.msra.mxu0 %v1340_v0 }
  0x94   :  { %616 = vmatprep.subr.bf16.mxu0 %v1341_v1  ;;  %v115_v1 = vld [vmem:[#allocation11 + $0x4] ss:$8 sm:$0x3] }
  0x95   :  { %867 = vmatpush1.bf16.msra.mxu1 %v1337_v59 }
  0x96   :  { %868 = vmatprep.subr.bf16.mxu1 %v1345_v60  ;;  %v291_v60 = vrot.slane %v111_v55, %v1715_v9 }
  0x97   :  { %617 = vmatpush1.bf16.msra.mxu0 %v1346_v2 }
  0x99   :  { %869 = vmatpush1.bf16.msra.mxu1 %v1343_v63 }
 0x147   :  { %v196_v14 = vpop.f32.mrb[0].mxu1 }
 0x148   :  { %v1721_v15 = vadd.f32 %v248_v12, %v196_v14  ;;  %v198_v16 = vpop.f32.mrb[1].mxu1 }
 0x149   :  { %v1723_v17 = vadd.f32 %v252_v13, %v198_v16  ;;  %v200_v18 = vpop.f32.mrb[2].mxu1 }
 0x14a   :  { %v201_v20 = vpop.f32.mrb[3].mxu1 }
 0x14b   :  { %v257_v21 = vadd.f32 %v1723_v17, %v1721_v15  ;;  %v1347_v20 = vld [vmem:[#allocation7 + $0xa4] ss:$8 sps:$4 sm:$0xff]  }
 0x14c   :  { %618 = vmatprep.subr.bf16.mxu0 %v1347_v20 }
 0x14d   :  { %258 = vadd.xlane.f32.xlu0 %v257_v21  ;;  %v1351_v21 = vld [vmem:[#allocation8 + $0x84] ss:$8 sps:$4 sm:$0xff]  }
 0x14e   :  { %870 = vmatprep.subr.bf16.mxu1 %v1351_v21 }
 0x14f   :  { %v237_v24 = vpop.f32.mrb[4].mxu1 }
 0x150   :  { %v1729_v25 = vadd.f32 %v306_v22, %v237_v24  ;;  %v239_v26 = vpop.f32.mrb[5].mxu1  ;;  %v1349_v22 = vld [vmem:[#allocation8 + $0x80] ss:$8 sps:$4 sm:$0xff]   ;;  %v1353_v24 = vld [vmem:[#allocation7 + $0xb4] ss:$8 sps:$4 sm:$0xff]  }
 0x151   :  { %v1731_v27 = vadd.f32 %v310_v23, %v239_v26  ;;  %v241_v28 = vpop.f32.mrb[6].mxu1  ;;  %v1352_v23 = vld [vmem:[#allocation7 + $0xa0] ss:$8 sps:$4 sm:$0xff]   ;;  %871 = vmatpush1.bf16.msra.mxu1 %v1349_v22  ;;  %v1357_v26 = vld [vmem:[#allocation8 + $0x94] ss:$8 sps:$4 sm:$0xff]  }
 0x152   :  { %v242_v29 = vpop.f32.mrb[7].mxu1  ;;  %619 = vmatpush1.bf16.msra.mxu0 %v1352_v23  ;;  %872 = vmatprep.subr.bf16.mxu1 %v1357_v26  ;;  %v1359_v28 = vld [vmem:[#allocation7 + $0xc4] ss:$8 sps:$4 sm:$0xff]  }
 0x153   :  { %v315_v30 = vadd.f32 %v1731_v27, %v1729_v25  ;;  %620 = vmatprep.subr.bf16.mxu0 %v1353_v24  ;;  %v1363_v29 = vld [vmem:[#allocation8 + $0xa4] ss:$8 sps:$4 sm:$0xff]  }
 0x155   :  { %316 = vadd.xlane.f32.xlu1 %v315_v30  ;;  %v1361_v30 = vld [vmem:[#allocation8 + $0xa0] ss:$8 sps:$4 sm:$0xff]  }
 0x1da   :  { %v259_v3 = vpop.xlane.xlu0 %258 }
 0x1db   :  { %v261_v4 = vmul.f32 0.00390625, %v259_v3 }
 0x1dd   :  { %v1736_v5 = vsub.f32 %v1721_v15, %v261_v4  ;;  %v1739_v6 = vsub.f32 %v1723_v17, %v261_v4  ;;  %v117_v4 = vld [vmem:[#allocation11 + $0x5] ss:$8 sm:$0x3] }
 0x1df   :  { %v264_v8 = vmul.f32 %v1736_v5, %v1736_v5  ;;  %v265_v10 = vmul.f32 %v1739_v6, %v1739_v6 }
 0x1e1   :  { %v266_v12 = vadd.f32 %v265_v10, %v264_v8 }
 0x1e2   :  { %v317_v13 = vpop.xlane.xlu1 %316 }
 0x1e3   :  { %v318_v14 = vmul.f32 0.00390625, %v317_v13  ;;  %267 = vadd.xlane.f32.xlu0 %v266_v12  ;;  %v335_v12 = vrot.slane %v115_v1, %v1715_v9  ;;  %v339_v13 = vrot.slane %v115_v1, %v1717_v11  ;;  %v1393_v1 = vld [vmem:[#allocation10 + $0x50] sm:$0xff]  }
 0x1e5   :  { %v1746_v16 = vsub.f32 %v1729_v25, %v318_v14  ;;  %v1749_v18 = vsub.f32 %v1731_v27, %v318_v14  ;;  %v1355_v25 = vld [vmem:[#allocation8 + $0x90] ss:$8 sps:$4 sm:$0xff]  }
 0x1e6   :  { %v1358_v27 = vld [vmem:[#allocation7 + $0xb0] ss:$8 sps:$4 sm:$0xff]   ;;  %873 = vmatpush1.bf16.msra.mxu1 %v1355_v25 }
 0x1e7   :  { %v321_v15 = vmul.f32 %v1746_v16, %v1746_v16  ;;  %v322_v17 = vmul.f32 %v1749_v18, %v1749_v18  ;;  %621 = vmatpush1.bf16.msra.mxu0 %v1358_v27  ;;  %874 = vmatprep.subr.bf16.mxu1 %v1363_v29  ;;  %v119_v29 = vld [vmem:[#allocation11 + $0x6] ss:$8 sm:$0x3] }
 0x1e8   :  { %622 = vmatprep.subr.bf16.mxu0 %v1359_v28 }
 0x1e9   :  { %v323_v19 = vadd.f32 %v322_v17, %v321_v15  ;;  %v352_v15 = vrot.slane %v117_v4, %v1717_v11 }
 0x1ea   :  { %875 = vmatpush1.bf16.msra.mxu1 %v1361_v30  ;;  %v431_v30 = vrot.slane %v119_v29, %v1715_v9 }
 0x1eb   :  { %324 = vadd.xlane.f32.xlu1 %v323_v19  ;;  %623 = vmatpush1.bf16.msra.mxu0 %v1364_v31  ;;  %v435_v31 = vrot.slane %v119_v29, %v1717_v11 }
 0x1ec   :  { %624 = vmatprep.subr.bf16.mxu0 %v1365_v32  ;;  %876 = vmatprep.subr.bf16.mxu1 %v1369_v34 }
 0x1ee   :  { %877 = vmatpush1.bf16.msra.mxu1 %v1367_v33 }
 0x1ef   :  { %625 = vmatpush1.bf16.msra.mxu0 %v1370_v35  ;;  %878 = vmatprep.subr.bf16.mxu1 %v1375_v37  ;;  %v125_v35 = vld [vmem:[#allocation11 + $0x11] ss:$8 sm:$0x3] }
 0x1f0   :  { %626 = vmatprep.subr.bf16.mxu0 %v1371_v36 }
 0x1f2   :  { %879 = vmatpush1.bf16.msra.mxu1 %v1373_v38  ;;  %v687_v38 = vrot.slane %v125_v35, %v1715_v9 }
 0x1f3   :  { %627 = vmatpush1.bf16.msra.mxu0 %v1376_v39  ;;  %880 = vmatprep.subr.bf16.mxu1 %v1381_v41  ;;  %v691_v39 = vrot.slane %v125_v35, %v1717_v11 }
 0x1f4   :  { %628 = vmatprep.subr.bf16.mxu0 %v1377_v40 }
 0x1f6   :  { %881 = vmatpush1.bf16.msra.mxu1 %v1379_v42 }
 0x1f7   :  { %629 = vmatpush1.bf16.msra.mxu0 %v1382_v43  ;;  %882 = vmatprep.subr.bf16.mxu1 %v1385_v44 }
 0x1fa   :  { %883 = vmatpush1.bf16.msra.mxu1 %v1383_v45 }
 0x1fb   :  { %884 = vmatprep.subr.bf16.mxu1 %v1388_v46 }
 0x1fe   :  { %885 = vmatpush1.bf16.msra.mxu1 %v1386_v47  ;;  %v1389_v47 = vld [vmem:[#allocation10 + $0x40] sm:$0xff]  }
 0x1ff   :  { %1249 = vmatprep.subr.bf16.mxu0 %v1389_v47 }
 0x270   :  { %v268_v48 = vpop.xlane.xlu0 %267 }
 0x271   :  { %v269_v49 = vmul.f32 0.00390625, %v268_v48  ;;  %v1390_v48 = vld [vmem:[#allocation10] sm:$0xff]  }
 0x273   :  { %v270_v50 = vadd.f32 1e-05, %v269_v49  ;;  %v1391_v49 = vld [vmem:[#allocation10 + $0x48] sm:$0xff]  }
 0x275   :  { %1405 = vrsqrt.f32 %v270_v50  ;;  %v1392_v50 = vld [vmem:[#allocation10 + $0x8] sm:$0xff]  }
 0x278   :  { %v325_v51 = vpop.xlane.xlu1 %324 }
 0x279   :  { %v326_v52 = vmul.f32 0.00390625, %v325_v51 }
 0x27b   :  { %v327_v53 = vadd.f32 1e-05, %v326_v52 }
 0x27d   :  { %1407 = vrsqrt.f32 %v327_v53 }
 0x27f   :  { %v1406_v58 = vpop.eup %1405 }
 0x280   :  { %v273_v59 = vmul.f32 %v1406_v58, %v1739_v6  ;;  %v272_v62 = vmul.f32 %v1406_v58, %v1736_v5  ;;  %v348_v6 = vrot.slane %v117_v4, %v1715_v9  ;;  %v1396_v4 = vld [vmem:[#allocation10 + $0x18] sm:$0xff]  }
 0x282   :  { %v286_v63 = vmul.f32 %v282_v57, %v273_v59  ;;  %v285_v0 = vmul.f32 %v278_v56, %v272_v62 }
 0x284   :  { %v299_v2 = vadd.f32 %v295_v61, %v286_v63  ;;  %v298_v3 = vadd.f32 %v291_v60, %v285_v0 }
 0x286   :  { %v301_v8 = vmax.f32 %v299_v2, 0.0  ;;  %v300_v10 = vmax.f32 %v298_v3, 0.0  ;;  %v1394_v2 = vld [vmem:[#allocation10 + $0x10] sm:$0xff]   ;;  %v1395_v3 = vld [vmem:[#allocation10 + $0x58] sm:$0xff]  }
 0x287   :  { %v1408_v14 = vpop.eup %1407 }
 0x288   :  { %v360_v17 = vpack.c.bf16 %v301_v8, %v301_v8  ;;  %v359_v19 = vpack.c.bf16 %v300_v10, %v300_v10  ;;  %v330_v5 = vmul.f32 %v1408_v14, %v1749_v18  ;;  %v329_v20 = vmul.f32 %v1408_v14, %v1746_v16  ;;  %v1397_v8 = vld [vmem:[#allocation10 + $0x60] sm:$0xff]   ;;  %v1401_v14 = vld [vmem:[#allocation10 + $0x70] sm:$0xff]  }
 0x289   :  { %v1398_v10 = vld [vmem:[#allocation10 + $0x20] sm:$0xff]  }
 0x28a   :  { %630 = vmatprep.mubr.bf16.mxu0 %v360_v17  ;;  %v343_v21 = vmul.f32 %v339_v13, %v330_v5  ;;  %v342_v22 = vmul.f32 %v335_v12, %v329_v20  ;;  %v1399_v12 = vld [vmem:[#allocation10 + $0x68] sm:$0xff]   ;;  %v1404_v17 = vld [vmem:[#allocation10 + $0x38] sm:$0xff]  }
 0x28b   :  { %631 = vmatmul.mubr.bf16.vlgmr.msra.gmra.mrb[0].mxu0 %v359_v19  ;;  %v1400_v13 = vld [vmem:[#allocation10 + $0x28] sm:$0xff]  }
 0x28c   :  { %v356_v23 = vadd.f32 %v352_v15, %v343_v21  ;;  %v355_v24 = vadd.f32 %v348_v6, %v342_v22  ;;  %1250 = vmatpush3.bf16.msra.mxu0 %v1390_v48  ;;  %v1402_v6 = vld [vmem:[#allocation10 + $0x30] sm:$0xff]   ;;  %v1403_v15 = vld [vmem:[#allocation10 + $0x78] sm:$0xff]  }
 0x28d   :  { %1251 = vmatprep.subr.bf16.mxu0 %v1391_v49  ;;  %v131_v48 = vld [vmem:[#allocation11 + $0x14] ss:$8 sm:$0x3] }
 0x28e   :  { %v358_v25 = vmax.f32 %v356_v23, 0.0  ;;  %v357_v26 = vmax.f32 %v355_v24, 0.0  ;;  %v121_v24 = vld [vmem:[#allocation11 + $0x7] ss:$8 sm:$0x3] }
 0x290   :  { %v394_v27 = vpack.c.bf16 %v358_v25, %v358_v25  ;;  %v393_v28 = vpack.c.bf16 %v357_v26, %v357_v26  ;;  %1252 = vmatpush3.bf16.msra.mxu0 %v1392_v50  ;;  %v123_v25 = vld [vmem:[#allocation11 + $0x10] ss:$8 sm:$0x3]  ;;  %v659_v26 = vrot.slane %v121_v24, %v1715_v9 }
 0x291   :  { %1253 = vmatprep.subr.bf16.mxu0 %v1393_v1  ;;  %v133_v1 = vld [vmem:[#allocation11 + $0x16] ss:$0 sm:$0xff] }
 0x292   :  { %886 = vmatprep.mubr.bf16.mxu1 %v394_v27  ;;  %v663_v27 = vrot.slane %v121_v24, %v1717_v11 }
 0x293   :  { %887 = vmatmul.mubr.bf16.vlgmr.msra.gmra.mrb[8].mxu1 %v393_v28 }
 0x294   :  { %1254 = vmatpush3.bf16.msra.mxu0 %v1394_v2 }
 0x295   :  { %1255 = vmatprep.subr.bf16.mxu0 %v1395_v3 }
 0x298   :  { %1256 = vmatpush3.bf16.msra.mxu0 %v1396_v4 }
 0x299   :  { %1257 = vmatprep.subr.bf16.mxu0 %v1397_v8 }
 0x29c   :  { %1258 = vmatpush3.bf16.msra.mxu0 %v1398_v10 }
 0x29d   :  { %1259 = vmatprep.subr.bf16.mxu0 %v1399_v12 }
 0x2a0   :  { %1260 = vmatpush3.bf16.msra.mxu0 %v1400_v13 }
 0x2a1   :  { %1261 = vmatprep.subr.bf16.mxu0 %v1401_v14  ;;  %v1136_v14 = vand.u32 127, %v245_v7 }
 0x2a3   :  { %vm1137_vm1 = vcmp.eq.s32.totalorder %v1136_v14, 127 }
 0x2a4   :  { %1262 = vmatpush3.bf16.msra.mxu0 %v1402_v6 }
 0x2a5   :  { %1263 = vmatprep.subr.bf16.mxu0 %v1403_v15 }
 0x2a8   :  { %1264 = vmatpush3.bf16.msra.mxu0 %v1404_v17 }
 0x35e   :  { %v632_v18 = vpop.f32.mrb[0].mxu0 }
 0x35f   :  { %v633_v32 = vadd.f32 %v632_v18, %v431_v30  ;;  %v634_v16 = vpop.f32.mrb[1].mxu0  ;;  %v672_v30 = vrot.slane %v123_v25, %v1715_v9 }
 0x360   :  { %v635_v33 = vadd.f32 %v634_v16, %v435_v31  ;;  %v636_v34 = vpop.f32.mrb[2].mxu0  ;;  %v676_v31 = vrot.slane %v123_v25, %v1717_v11 }
 0x361   :  { %v637_v36 = vpop.f32.mrb[3].mxu0 }
 0x362   :  { %v639_v37 = vadd.f32 %v635_v33, %v633_v32  ;;  %v129_v36 = vld [vmem:[#allocation11 + $0x13] ss:$8 sm:$0x3] }
 0x364   :  { %640 = vadd.xlane.f32.xlu0 %v639_v37 }
 0x366   :  { %v888_v40 = vpop.f32.mrb[8].mxu1 }
 0x367   :  { %v889_v41 = vadd.f32 %v888_v40, %v687_v38  ;;  %v890_v42 = vpop.f32.mrb[9].mxu1 }
 0x368   :  { %v891_v43 = vadd.f32 %v890_v42, %v691_v39  ;;  %v892_v44 = vpop.f32.mrb[10].mxu1  ;;  %v928_v42 = vrot.slane %v129_v36, %v1715_v9 }
 0x369   :  { %v893_v45 = vpop.f32.mrb[11].mxu1 }
 0x36a   :  { %v895_v46 = vadd.f32 %v891_v43, %v889_v41 }
 0x36c   :  { %896 = vadd.xlane.f32.xlu0 %v895_v46 }
 0x3f1   :  { %v641_v51 = vpop.xlane.xlu0 %640 }
 0x3f2   :  { %v642_v52 = vmul.f32 0.00390625, %v641_v51 }
 0x3f4   :  { %v643_v53 = vsub.f32 %v633_v32, %v642_v52  ;;  %v644_v54 = vsub.f32 %v635_v33, %v642_v52  ;;  %v127_v33 = vld [vmem:[#allocation11 + $0x12] ss:$8 sm:$0x3] }
 0x3f5   :  { %v915_v39 = vrot.slane %v127_v33, %v1715_v9  ;;  %v919_v40 = vrot.slane %v127_v33, %v1717_v11 }
 0x3f6   :  { %v645_v55 = vmul.f32 %v643_v53, %v643_v53  ;;  %v646_v56 = vmul.f32 %v644_v54, %v644_v54 }
 0x3f8   :  { %v647_v57 = vadd.f32 %v646_v56, %v645_v55 }
 0x3f9   :  { %v897_v58 = vpop.xlane.xlu0 %896 }
 0x3fa   :  { %v898_v59 = vmul.f32 0.00390625, %v897_v58  ;;  %648 = vadd.xlane.f32.xlu1 %v647_v57 }
 0x3fc   :  { %v899_v60 = vsub.f32 %v889_v41, %v898_v59  ;;  %v900_v61 = vsub.f32 %v891_v43, %v898_v59  ;;  %v932_v43 = vrot.slane %v129_v36, %v1717_v11 }
 0x3fe   :  { %v901_v62 = vmul.f32 %v899_v60, %v899_v60  ;;  %v902_v63 = vmul.f32 %v900_v61, %v900_v61 }
 0x400   :  { %v903_v0 = vadd.f32 %v902_v63, %v901_v62  ;;  %v132_v62 = vld [vmem:[#allocation11 + $0x15] ss:$0 sm:$0xff] }
 0x402   :  { %904 = vadd.xlane.f32.xlu1 %v903_v0 }
 0x487   :  { %v649_v19 = vpop.xlane.xlu1 %648 }
 0x488   :  { %v650_v5 = vmul.f32 0.00390625, %v649_v19 }
 0x48a   :  { %v651_v20 = vadd.f32 1e-05, %v650_v5 }
 0x48c   :  { %1409 = vrsqrt.f32 %v651_v20 }
 0x48f   :  { %v905_v21 = vpop.xlane.xlu1 %904 }
 0x490   :  { %v906_v22 = vmul.f32 0.00390625, %v905_v21 }
 0x492   :  { %v907_v23 = vadd.f32 1e-05, %v906_v22 }
 0x494   :  { %1411 = vrsqrt.f32 %v907_v23 }
 0x496   :  { %v1410_v28 = vpop.eup %1409 }
 0x497   :  { %v654_v29 = vmul.f32 %v1410_v28, %v644_v54  ;;  %v653_v18 = vmul.f32 %v1410_v28, %v643_v53  ;;  %v1122_v53 = vrot.slane %v131_v48, %v1715_v9  ;;  %v1126_v54 = vrot.slane %v131_v48, %v1717_v11 }
 0x499   :  { %v667_v32 = vmul.f32 %v663_v27, %v654_v29  ;;  %v666_v16 = vmul.f32 %v659_v26, %v653_v18 }
 0x49b   :  { %v680_v34 = vadd.f32 %v676_v31, %v667_v32  ;;  %v679_v35 = vadd.f32 %v672_v30, %v666_v16 }
 0x49d   :  { %v682_v37 = vmax.f32 %v680_v34, 0.0  ;;  %v681_v38 = vmax.f32 %v679_v35, 0.0 }
 0x49e   :  { %v1412_v41 = vpop.eup %1411 }
 0x49f   :  { %v940_v44 = vpack.c.bf16 %v682_v37, %v682_v37  ;;  %v939_v45 = vpack.c.bf16 %v681_v38, %v681_v38  ;;  %v909_v46 = vmul.f32 %v1412_v41, %v899_v60  ;;  %v910_v47 = vmul.f32 %v1412_v41, %v900_v61 }
 0x4a1   :  { %1101 = vmatprep.mubr.bf16.mxu0 %v940_v44  ;;  %v922_v49 = vmul.f32 %v915_v39, %v909_v46  ;;  %v923_v50 = vmul.f32 %v919_v40, %v910_v47 }
 0x4a2   :  { %1102 = vmatmul.mubr.bf16.vlgmr.msra.gmra.mrb[4].mxu0 %v939_v45 }
 0x4a3   :  { %v935_v51 = vadd.f32 %v928_v42, %v922_v49  ;;  %v936_v52 = vadd.f32 %v932_v43, %v923_v50 }
 0x4a5   :  { %v937_v55 = vmax.f32 %v935_v51, 0.0  ;;  %v938_v56 = vmax.f32 %v936_v52, 0.0 }
 0x4a7   :  { %v1129_v57 = vmul.f32 %v1122_v53, %v937_v55  ;;  %v1130_v58 = vmul.f32 %v1126_v54, %v938_v56 }
 0x4a9   :  { %v1131_v59 = vadd.f32 %v1130_v58, %v1129_v57 }
 0x4ab   :  { %1132 = vadd.xlane.f32.xlu1 %v1131_v59 }
 0x538   :  { %v1133_v60 = vpop.xlane.xlu1 %1132 }
 0x539   :  { %v1134_v61 = vadd.f32 %v1133_v60, %v132_v62 }
 0x53b   :  { %1140 = vperm.xlu1 %1285, %v1134_v61  }
 0x575   :  { %v1265_v63 = vpop.f32.mrb[4].mxu0 }
 0x576   :  { %v1266_v0 = vpop.f32.mrb[5].mxu0 }
 0x577   :  { %v1267_v2 = vadd.f32 %v1266_v0, %v1265_v63  ;;  %v1268_v3 = vpop.f32.mrb[6].mxu0 }
 0x578   :  { %v1269_v4 = vpop.f32.mrb[7].mxu0 }
 0x579   :  { %v1104_v8 = vadd.f32 %v1267_v2, %v133_v1 }
 0x57b   :  { %1109 = vmax.xlane.f32.xlu0 %v1104_v8 }
 0x5ba   :  { %v1141_v17 = vpop.permute.xlu1 %1140 }
 0x608   :  { %v1110_v9 = vpop.xlane.xlu0 %1109 }
 0x609   :  { %v1111_v11 = vsub.f32 %v1104_v8, %v1110_v9 }
 0x60b   :  { %v1112_v10 = vmul.f32 1.442695, %v1111_v11 }
 0x60d   :  { %1413 = vpow2.f32 %v1112_v10 }
 0x617   :  { %v1414_v12 = vpop.eup %1413 }
 0x618   :  { %1114 = vadd.xlane.f32.xlu0 %v1414_v12 }
 0x6a5   :  { %v1115_v13 = vpop.xlane.xlu0 %1114 }
 0x6a6   :  { %1415 = vrcp.f32 %v1115_v13 }
 0x6b0   :  { %v1416_v6 = vpop.eup %1415 }
 0x6b1   :  { %v1117_v15 = vmul.f32 %v1416_v6, %v1414_v12 }
 0x6b3   :  { %v1143_v19 = vsel %vm1137_vm1, %v1141_v17, %v1117_v15 }
 0x6b4   :  { %1144 = vst [vmem:[#allocation13] sm:$0xff] %v1143_v19 }
 0x6b5   :  { %1560 = shalt.err (!%p1557_p10)
}
 0x6b6   :  { %s1561_s26 = scalar_lea.hbm %s1800_s6, 128 }
 0x6b7   :  { %p1562_p11 = scmp.ne.s32.totalorder %s1800_s6, %s1561_s26  ;;  %p1565_p12 = scmp.lt.u32.totalorder %s1561_s26, %s1800_s6 }
 0x6b9   :  { %p1567_p13 = pnand %p1565_p12, %p1562_p11 }
 0x6bb   :  { %1570 = shalt.err (!%p1567_p13)
}
 0x6bc   :  { %1154 = dma.vmem_to_hbm [thread:$0]  %s1152_s7, 128, %s1800_s6, [#allocation4]  }
 0x6bd   :  { %1579 = dma.done.wait [#allocation4], 128  }
 0x6be   :  { %1580 = vsyncadd [#allocation4], 4294967168 }
 0x6bf   :  { %1158 = vsyncpa [#allocation3], 1 }
 0x6c0   :  { %1159 = vsyncpa [#allocation6], 1 }
 0x6c1   :  { %1160 = vsyncpa [#allocation9], 1 }
 0x6c2   :  { %1161 = vsyncpa [#allocation12], 1 }
 0x6c3   :  { %1162 = vsyncpa [#allocation4], 1 }

</bundles_post_ra>
